<compile_context>
chip_gen: v7x
topology: tpu7x:2x2x1
jax: 0.10.0
libtpu: 0.0.40
codegen_flags: <defaults>
</compile_context>

<pallas_src>
import jax
import jax.numpy as jnp
from jax.experimental import pallas as pl
from jax.experimental.pallas import tpu as pltpu


def _round_up(n: int, m: int) -> int:
    return (n + m - 1) // m * m


# ----------------------------- kernels ------------------------------------ #

def _resblock_kernel_shortcut(x_ref, w1_ref, b1_ref, w2_ref, b2_ref,
                              ws_ref, bs_ref, o_ref):
    """Fused residual block with a Linear shortcut (input_dim != output_dim)."""
    x = x_ref[...]
    # linear1 + relu (f32 accumulate)
    h = jnp.dot(x, w1_ref[...], preferred_element_type=jnp.float32) + b1_ref[...]
    h = jnp.maximum(h, 0.0)
    # linear2
    y = jnp.dot(h.astype(w2_ref.dtype), w2_ref[...],
                preferred_element_type=jnp.float32) + b2_ref[...]
    # shortcut linear
    sc = jnp.dot(x, ws_ref[...], preferred_element_type=jnp.float32) + bs_ref[...]
    # residual add + relu
    o_ref[...] = jnp.maximum(y + sc, 0.0).astype(o_ref.dtype)


def _resblock_kernel_identity(x_ref, w1_ref, b1_ref, w2_ref, b2_ref, o_ref):
    """Fused residual block with identity shortcut (input_dim == output_dim)."""
    x = x_ref[...]
    h = jnp.dot(x, w1_ref[...], preferred_element_type=jnp.float32) + b1_ref[...]
    h = jnp.maximum(h, 0.0)
    y = jnp.dot(h.astype(w2_ref.dtype), w2_ref[...],
                preferred_element_type=jnp.float32) + b2_ref[...]
    o_ref[...] = jnp.maximum(y + x.astype(jnp.float32), 0.0).astype(o_ref.dtype)


# ----------------------------- wrapper ------------------------------------ #

def residual_block_1d(x, params, *, block_b=512, compute_dtype=None,
                      single_buffer_weights=True):
    """Apply ResidualBlock1d to x of shape (batch, input_dim).

    params: w1 (in,out), b1 (1,out), w2 (out,out), b2 (1,out), and optionally
            ws (in,out), bs (1,out) when input_dim != output_dim.
    compute_dtype: optionally jnp.bfloat16 to feed the MXU bf16 inputs on
            v6e/v7x (accumulation stays f32). Default: keep x.dtype.
    """
    B, D_in = x.shape
    D_out = params["w1"].shape[1]
    has_shortcut = "ws" in params
    out_dtype = x.dtype
    cdt = jnp.dtype(compute_dtype) if compute_dtype is not None else jnp.dtype(x.dtype)

    # ---- lane-dense padding: contraction (K) and output (N) dims -> x128 ----
    D_in_p = _round_up(D_in, 128)
    D_out_p = _round_up(D_out, 128)

    # ---- batch tiling: big M tiles; ragged batches padded with zero rows ----
    block_b = max(8, min(block_b, _round_up(B, 8)))
    # give v7x's two TensorCores something to split when the batch is large
    if B > 256 and pl.cdiv(B, block_b) < 2:
        block_b = max(8, _round_up(pl.cdiv(B, 2), 8))
    B_p = _round_up(B, block_b)
    grid = (B_p // block_b,)

    def pad2(a, r, c):
        pr, pc = r - a.shape[0], c - a.shape[1]
        if pr or pc:
            a = jnp.pad(a, ((0, pr), (0, pc)))
        return a

    x_p = pad2(x, B_p, D_in_p).astype(cdt)
    w1 = pad2(params["w1"], D_in_p, D_out_p).astype(cdt)
    b1 = pad2(params["b1"], 1, D_out_p).astype(jnp.float32)
    w2 = pad2(params["w2"], D_out_p, D_out_p).astype(cdt)
    b2 = pad2(params["b2"], 1, D_out_p).astype(jnp.float32)

    if has_shortcut:
        ws = pad2(params["ws"], D_in_p, D_out_p).astype(cdt)
        bs = pad2(params["bs"], 1, D_out_p).astype(jnp.float32)
        kernel = _resblock_kernel_shortcut
        weights = (w1, b1, w2, b2, ws, bs)
    else:
        kernel = _resblock_kernel_identity
        weights = (w1, b1, w2, b2)
    args = (x_p,) + weights

    weight_bytes = sum(int(w.size) * w.dtype.itemsize for w in weights)

    # advisory cost estimate for XLA's scheduler around the custom call
    flops = 2 * B_p * (D_in_p * D_out_p + D_out_p * D_out_p)
    if has_shortcut:
        flops += 2 * B_p * D_in_p * D_out_p
    bytes_accessed = (int(x_p.size) * x_p.dtype.itemsize
                      + weight_bytes
                      + B_p * D_out_p * jnp.dtype(out_dtype).itemsize)
    cost = pl.CostEstimate(flops=flops, transcendentals=0,
                           bytes_accessed=bytes_accessed)

    def run(use_single_buffer):
        def wspec(shape):
            # grid-invariant operands: single-buffered to save VMEM
            if use_single_buffer:
                return pl.BlockSpec(shape, lambda i: (0, 0),
                                    pipeline_mode=pl.Buffered(1))
            return pl.BlockSpec(shape, lambda i: (0, 0))

        x_spec = pl.BlockSpec((block_b, D_in_p), lambda i: (i, 0))
        o_spec = pl.BlockSpec((block_b, D_out_p), lambda i: (i, 0))
        in_specs = [x_spec] + [wspec(w.shape) for w in weights]

        # VMEM budget: weights (x1 or x2) + double-buffered x/out tiles
        # + f32 intermediates headroom; clamp to v7x's 64 MiB ceiling.
        wb = 1 if use_single_buffer else 2
        vmem_needed = (wb * weight_bytes
                       + 2 * block_b * (D_in_p + D_out_p) * cdt.itemsize
                       + 4 * block_b * D_out_p * 4)
        vmem_limit = int(min(max(2 * vmem_needed, 32 << 20), 64 << 20))

        return pl.pallas_call(
            kernel,
            out_shape=jax.ShapeDtypeStruct((B_p, D_out_p), out_dtype),
            grid_spec=pltpu.PrefetchScalarGridSpec(
                num_scalar_prefetch=0,
                grid=grid,
                in_specs=in_specs,
                out_specs=o_spec,
            ),
            compiler_params=pltpu.CompilerParams(
                dimension_semantics=("parallel",),
                vmem_limit_bytes=vmem_limit,
            ),
            cost_estimate=cost,
        )(*args)

    if single_buffer_weights:
        try:
            out_p = run(True)
        except Exception:
            # fall back to default (double) buffering if Buffered(1) rejects
            out_p = run(False)
    else:
        out_p = run(False)

    # strip the batch / lane padding
    return out_p[:B, :D_out]


# ----------------------------- init & reference ---------------------------- #

def init_params(key, input_dim, output_dim, dtype=jnp.float32):
    """Deterministic init: Kaiming-uniform-like weights, zero biases.

    Weights are stored transposed, shape (in, out), so the kernel computes
    x @ W (equivalent to PyTorch's x @ weight.T).
    """
    def kaiming_uniform(k, fan_in, shape):
        bound = (6.0 / fan_in) ** 0.5
        return jax.random.uniform(k, shape, dtype, minval=-bound, maxval=bound)

    k1, k2, k3 = jax.random.split(key, 3)
    params = {
        "w1": kaiming_uniform(k1, input_dim, (input_dim, output_dim)),
        "b1": jnp.zeros((1, output_dim), dtype),
        "w2": kaiming_uniform(k2, output_dim, (output_dim, output_dim)),
        "b2": jnp.zeros((1, output_dim), dtype),
    }
    if input_dim != output_dim:
        params["ws"] = kaiming_uniform(k3, input_dim, (input_dim, output_dim))
        params["bs"] = jnp.zeros((1, output_dim), dtype)
    return params


def reference(x, params):
    """Pure-JAX reference of the PyTorch forward."""
    h = jnp.maximum(x @ params["w1"] + params["b1"], 0.0)
    y = h @ params["w2"] + params["b2"]
    sc = x @ params["ws"] + params["bs"] if "ws" in params else x
    return jnp.maximum(y + sc, 0.0)


if __name__ == "__main__":
    key = jax.random.PRNGKey(0)
    batch, input_dim, output_dim = 8, 32, 64

    kx, kp1, kp2 = jax.random.split(key, 3)

    # projection-shortcut path (input_dim != output_dim)
    x = jax.random.normal(kx, (batch, input_dim), jnp.float32)
    params_proj = init_params(kp1, input_dim, output_dim)
    out = jax.block_until_ready(residual_block_1d(x, params_proj))
    ref = reference(x, params_proj)
    assert out.shape == (batch, output_dim)
    assert jnp.allclose(out, ref, atol=1e-4, rtol=1e-4), "mismatch (shortcut path)"

    # identity-shortcut path (input_dim == output_dim)
    x2 = jax.random.normal(kx, (batch, output_dim), jnp.float32)
    params_id = init_params(kp2, output_dim, output_dim)
    out2 = jax.block_until_ready(residual_block_1d(x2, params_id))
    ref2 = reference(x2, params_id)
    assert out2.shape == (batch, output_dim)
    assert jnp.allclose(out2, ref2, atol=1e-4, rtol=1e-4), "mismatch (identity path)"

    print("KERNEL_OK")
</pallas_src>

<mosaic_0001>
module attributes {stable_mosaic.version = 11 : i64} {
  func.func @_resblock_kernel_shortcut(%arg0: i32, %arg1: memref<8x128xf32, #tpu.memory_space<vmem>>, %arg2: memref<128x128xf32, #tpu.memory_space<vmem>>, %arg3: memref<1x128xf32, #tpu.memory_space<vmem>>, %arg4: memref<128x128xf32, #tpu.memory_space<vmem>>, %arg5: memref<1x128xf32, #tpu.memory_space<vmem>>, %arg6: memref<128x128xf32, #tpu.memory_space<vmem>>, %arg7: memref<1x128xf32, #tpu.memory_space<vmem>>, %arg8: memref<8x128xf32, #tpu.memory_space<vmem>>) attributes {dimension_semantics = [#tpu.dimension_semantics<parallel>], iteration_bounds = array<i64: 1>, scalar_prefetch = 0 : i64, scratch_operands = 0 : i64, tpu.core_type = #tpu.core_type<tc>, window_params = [{transform_indices = @transform_0, window_bounds = array<i64: 8, 128>}, {pipeline_mode = #tpu.pipeline_mode<synchronous>, transform_indices = @transform_1, window_bounds = array<i64: 128, 128>}, {pipeline_mode = #tpu.pipeline_mode<synchronous>, transform_indices = @transform_2, window_bounds = array<i64: 1, 128>}, {pipeline_mode = #tpu.pipeline_mode<synchronous>, transform_indices = @transform_3, window_bounds = array<i64: 128, 128>}, {pipeline_mode = #tpu.pipeline_mode<synchronous>, transform_indices = @transform_4, window_bounds = array<i64: 1, 128>}, {pipeline_mode = #tpu.pipeline_mode<synchronous>, transform_indices = @transform_5, window_bounds = array<i64: 128, 128>}, {pipeline_mode = #tpu.pipeline_mode<synchronous>, transform_indices = @transform_6, window_bounds = array<i64: 1, 128>}, {transform_indices = @transform_7, window_bounds = array<i64: 8, 128>}]} {
    %c0 = arith.constant 0 : index
    %c0_0 = arith.constant 0 : index
    %0 = vector.load %arg1[%c0, %c0_0] : memref<8x128xf32, #tpu.memory_space<vmem>>, vector<8x128xf32>
    %c0_1 = arith.constant 0 : index
    %c0_2 = arith.constant 0 : index
    %1 = vector.load %arg2[%c0_1, %c0_2] : memref<128x128xf32, #tpu.memory_space<vmem>>, vector<128x128xf32>
    %cst = arith.constant dense<0.000000e+00> : vector<8x128xf32>
    %2 = tpu.matmul %0, %1, %cst {dimension_numbers = #tpu.dot_dimension_numbers<[1], [0], [0], [1], [0, 0, 1, 1], [], []>} : vector<8x128xf32>, vector<128x128xf32>, vector<8x128xf32> -> vector<8x128xf32>
    %c0_3 = arith.constant 0 : index
    %c0_4 = arith.constant 0 : index
    %3 = vector.load %arg3[%c0_3, %c0_4] : memref<1x128xf32, #tpu.memory_space<vmem>>, vector<1x128xf32>
    %4 = vector.broadcast %3 : vector<1x128xf32> to vector<8x128xf32>
    %5 = arith.addf %2, %4 : vector<8x128xf32>
    %cst_5 = arith.constant 0.000000e+00 : f32
    %6 = vector.broadcast %cst_5 : f32 to vector<8x128xf32>
    %7 = arith.maximumf %5, %6 : vector<8x128xf32>
    %c0_6 = arith.constant 0 : index
    %c0_7 = arith.constant 0 : index
    %8 = vector.load %arg4[%c0_6, %c0_7] : memref<128x128xf32, #tpu.memory_space<vmem>>, vector<128x128xf32>
    %cst_8 = arith.constant dense<0.000000e+00> : vector<8x128xf32>
    %9 = tpu.matmul %7, %8, %cst_8 {dimension_numbers = #tpu.dot_dimension_numbers<[1], [0], [0], [1], [0, 0, 1, 1], [], []>} : vector<8x128xf32>, vector<128x128xf32>, vector<8x128xf32> -> vector<8x128xf32>
    %c0_9 = arith.constant 0 : index
    %c0_10 = arith.constant 0 : index
    %10 = vector.load %arg5[%c0_9, %c0_10] : memref<1x128xf32, #tpu.memory_space<vmem>>, vector<1x128xf32>
    %11 = vector.broadcast %10 : vector<1x128xf32> to vector<8x128xf32>
    %12 = arith.addf %9, %11 : vector<8x128xf32>
    %c0_11 = arith.constant 0 : index
    %c0_12 = arith.constant 0 : index
    %13 = vector.load %arg6[%c0_11, %c0_12] : memref<128x128xf32, #tpu.memory_space<vmem>>, vector<128x128xf32>
    %cst_13 = arith.constant dense<0.000000e+00> : vector<8x128xf32>
    %14 = tpu.matmul %0, %13, %cst_13 {dimension_numbers = #tpu.dot_dimension_numbers<[1], [0], [0], [1], [0, 0, 1, 1], [], []>} : vector<8x128xf32>, vector<128x128xf32>, vector<8x128xf32> -> vector<8x128xf32>
    %c0_14 = arith.constant 0 : index
    %c0_15 = arith.constant 0 : index
    %15 = vector.load %arg7[%c0_14, %c0_15] : memref<1x128xf32, #tpu.memory_space<vmem>>, vector<1x128xf32>
    %16 = vector.broadcast %15 : vector<1x128xf32> to vector<8x128xf32>
    %17 = arith.addf %14, %16 : vector<8x128xf32>
    %18 = arith.addf %12, %17 : vector<8x128xf32>
    %cst_16 = arith.constant 0.000000e+00 : f32
    %19 = vector.broadcast %cst_16 : f32 to vector<8x128xf32>
    %20 = arith.maximumf %18, %19 : vector<8x128xf32>
    %c0_17 = arith.constant 0 : index
    %c0_18 = arith.constant 0 : index
    %21 = vector.load %arg8[%c0_17, %c0_18] : memref<8x128xf32, #tpu.memory_space<vmem>>, vector<8x128xf32>
    tpu.vector_store %arg8[%c0_17, %c0_18], %20 {strides = array<i32>} : memref<8x128xf32, #tpu.memory_space<vmem>>, vector<8x128xf32>,
    return
  }
  func.func @transform_0(%arg0: i32) -> (i32, i32) {
    %c0_i32 = arith.constant 0 : i32
    %c0_i32_0 = arith.constant 0 : i32
    return %arg0, %c0_i32 : i32, i32
  }
  func.func @transform_1(%arg0: i32) -> (i32, i32) {
    %c0_i32 = arith.constant 0 : i32
    %c0_i32_0 = arith.constant 0 : i32
    %c0_i32_1 = arith.constant 0 : i32
    return %c0_i32, %c0_i32_0 : i32, i32
  }
  func.func @transform_2(%arg0: i32) -> (i32, i32) {
    %c0_i32 = arith.constant 0 : i32
    %c0_i32_0 = arith.constant 0 : i32
    %c0_i32_1 = arith.constant 0 : i32
    return %c0_i32, %c0_i32_0 : i32, i32
  }
  func.func @transform_3(%arg0: i32) -> (i32, i32) {
    %c0_i32 = arith.constant 0 : i32
    %c0_i32_0 = arith.constant 0 : i32
    %c0_i32_1 = arith.constant 0 : i32
    return %c0_i32, %c0_i32_0 : i32, i32
  }
  func.func @transform_4(%arg0: i32) -> (i32, i32) {
    %c0_i32 = arith.constant 0 : i32
    %c0_i32_0 = arith.constant 0 : i32
    %c0_i32_1 = arith.constant 0 : i32
    return %c0_i32, %c0_i32_0 : i32, i32
  }
  func.func @transform_5(%arg0: i32) -> (i32, i32) {
    %c0_i32 = arith.constant 0 : i32
    %c0_i32_0 = arith.constant 0 : i32
    %c0_i32_1 = arith.constant 0 : i32
    return %c0_i32, %c0_i32_0 : i32, i32
  }
  func.func @transform_6(%arg0: i32) -> (i32, i32) {
    %c0_i32 = arith.constant 0 : i32
    %c0_i32_0 = arith.constant 0 : i32
    %c0_i32_1 = arith.constant 0 : i32
    return %c0_i32, %c0_i32_0 : i32, i32
  }
  func.func @transform_7(%arg0: i32) -> (i32, i32) {
    %c0_i32 = arith.constant 0 : i32
    %c0_i32_0 = arith.constant 0 : i32
    return %arg0, %c0_i32 : i32, i32
  }
}

module attributes {stable_mosaic.version = 11 : i64} {
  func.func @_resblock_kernel_shortcut(%arg0: i32, %arg1: memref<8x128xf32, #tpu.memory_space<vmem>>, %arg2: memref<128x128xf32, #tpu.memory_space<vmem>>, %arg3: memref<1x128xf32, #tpu.memory_space<vmem>>, %arg4: memref<128x128xf32, #tpu.memory_space<vmem>>, %arg5: memref<1x128xf32, #tpu.memory_space<vmem>>, %arg6: memref<128x128xf32, #tpu.memory_space<vmem>>, %arg7: memref<1x128xf32, #tpu.memory_space<vmem>>, %arg8: memref<8x128xf32, #tpu.memory_space<vmem>>) attributes {dimension_semantics = [#tpu.dimension_semantics<parallel>], iteration_bounds = array<i64: 1>, scalar_prefetch = 0 : i64, scratch_operands = 0 : i64, tpu.core_type = #tpu.core_type<tc>, window_params = [{transform_indices = @transform_0, window_bounds = array<i64: 8, 128>}, {pipeline_mode = #tpu.pipeline_mode<synchronous>, transform_indices = @transform_1, window_bounds = array<i64: 128, 128>}, {pipeline_mode = #tpu.pipeline_mode<synchronous>, transform_indices = @transform_2, window_bounds = array<i64: 1, 128>}, {pipeline_mode = #tpu.pipeline_mode<synchronous>, transform_indices = @transform_3, window_bounds = array<i64: 128, 128>}, {pipeline_mode = #tpu.pipeline_mode<synchronous>, transform_indices = @transform_4, window_bounds = array<i64: 1, 128>}, {pipeline_mode = #tpu.pipeline_mode<synchronous>, transform_indices = @transform_5, window_bounds = array<i64: 128, 128>}, {pipeline_mode = #tpu.pipeline_mode<synchronous>, transform_indices = @transform_6, window_bounds = array<i64: 1, 128>}, {transform_indices = @transform_7, window_bounds = array<i64: 8, 128>}]} {
    %c0 = arith.constant 0 : index
    %c0_0 = arith.constant 0 : index
    %0 = vector.load %arg1[%c0, %c0_0] : memref<8x128xf32, #tpu.memory_space<vmem>>, vector<8x128xf32>
    %c0_1 = arith.constant 0 : index
    %c0_2 = arith.constant 0 : index
    %1 = vector.load %arg2[%c0_1, %c0_2] : memref<128x128xf32, #tpu.memory_space<vmem>>, vector<128x128xf32>
    %cst = arith.constant dense<0.000000e+00> : vector<8x128xf32>
    %2 = tpu.matmul %0, %1, %cst {dimension_numbers = #tpu.dot_dimension_numbers<[1], [0], [0], [1], [0, 0, 1, 1], [], []>} : vector<8x128xf32>, vector<128x128xf32>, vector<8x128xf32> -> vector<8x128xf32>
    %c0_3 = arith.constant 0 : index
    %c0_4 = arith.constant 0 : index
    %3 = vector.load %arg3[%c0_3, %c0_4] : memref<1x128xf32, #tpu.memory_space<vmem>>, vector<1x128xf32>
    %4 = vector.broadcast %3 : vector<1x128xf32> to vector<8x128xf32>
    %5 = arith.addf %2, %4 : vector<8x128xf32>
    %cst_5 = arith.constant 0.000000e+00 : f32
    %6 = vector.broadcast %cst_5 : f32 to vector<8x128xf32>
    %7 = arith.maximumf %5, %6 : vector<8x128xf32>
    %c0_6 = arith.constant 0 : index
    %c0_7 = arith.constant 0 : index
    %8 = vector.load %arg4[%c0_6, %c0_7] : memref<128x128xf32, #tpu.memory_space<vmem>>, vector<128x128xf32>
    %cst_8 = arith.constant dense<0.000000e+00> : vector<8x128xf32>
    %9 = tpu.matmul %7, %8, %cst_8 {dimension_numbers = #tpu.dot_dimension_numbers<[1], [0], [0], [1], [0, 0, 1, 1], [], []>} : vector<8x128xf32>, vector<128x128xf32>, vector<8x128xf32> -> vector<8x128xf32>
    %c0_9 = arith.constant 0 : index
    %c0_10 = arith.constant 0 : index
    %10 = vector.load %arg5[%c0_9, %c0_10] : memref<1x128xf32, #tpu.memory_space<vmem>>, vector<1x128xf32>
    %11 = vector.broadcast %10 : vector<1x128xf32> to vector<8x128xf32>
    %12 = arith.addf %9, %11 : vector<8x128xf32>
    %c0_11 = arith.constant 0 : index
    %c0_12 = arith.constant 0 : index
    %13 = vector.load %arg6[%c0_11, %c0_12] : memref<128x128xf32, #tpu.memory_space<vmem>>, vector<128x128xf32>
    %cst_13 = arith.constant dense<0.000000e+00> : vector<8x128xf32>
    %14 = tpu.matmul %0, %13, %cst_13 {dimension_numbers = #tpu.dot_dimension_numbers<[1], [0], [0], [1], [0, 0, 1, 1], [], []>} : vector<8x128xf32>, vector<128x128xf32>, vector<8x128xf32> -> vector<8x128xf32>
    %c0_14 = arith.constant 0 : index
    %c0_15 = arith.constant 0 : index
    %15 = vector.load %arg7[%c0_14, %c0_15] : memref<1x128xf32, #tpu.memory_space<vmem>>, vector<1x128xf32>
    %16 = vector.broadcast %15 : vector<1x128xf32> to vector<8x128xf32>
    %17 = arith.addf %14, %16 : vector<8x128xf32>
    %18 = arith.addf %12, %17 : vector<8x128xf32>
    %cst_16 = arith.constant 0.000000e+00 : f32
    %19 = vector.broadcast %cst_16 : f32 to vector<8x128xf32>
    %20 = arith.maximumf %18, %19 : vector<8x128xf32>
    %c0_17 = arith.constant 0 : index
    %c0_18 = arith.constant 0 : index
    %21 = vector.load %arg8[%c0_17, %c0_18] : memref<8x128xf32, #tpu.memory_space<vmem>>, vector<8x128xf32>
    tpu.vector_store %arg8[%c0_17, %c0_18], %20 {strides = array<i32>} : memref<8x128xf32, #tpu.memory_space<vmem>>, vector<8x128xf32>,
    return
  }
  func.func @transform_0(%arg0: i32) -> (i32, i32) {
    %c0_i32 = arith.constant 0 : i32
    %c0_i32_0 = arith.constant 0 : i32
    return %arg0, %c0_i32 : i32, i32
  }
  func.func @transform_1(%arg0: i32) -> (i32, i32) {
    %c0_i32 = arith.constant 0 : i32
    %c0_i32_0 = arith.constant 0 : i32
    %c0_i32_1 = arith.constant 0 : i32
    return %c0_i32, %c0_i32_0 : i32, i32
  }
  func.func @transform_2(%arg0: i32) -> (i32, i32) {
    %c0_i32 = arith.constant 0 : i32
    %c0_i32_0 = arith.constant 0 : i32
    %c0_i32_1 = arith.constant 0 : i32
    return %c0_i32, %c0_i32_0 : i32, i32
  }
  func.func @transform_3(%arg0: i32) -> (i32, i32) {
    %c0_i32 = arith.constant 0 : i32
    %c0_i32_0 = arith.constant 0 : i32
    %c0_i32_1 = arith.constant 0 : i32
    return %c0_i32, %c0_i32_0 : i32, i32
  }
  func.func @transform_4(%arg0: i32) -> (i32, i32) {
    %c0_i32 = arith.constant 0 : i32
    %c0_i32_0 = arith.constant 0 : i32
    %c0_i32_1 = arith.constant 0 : i32
    return %c0_i32, %c0_i32_0 : i32, i32
  }
  func.func @transform_5(%arg0: i32) -> (i32, i32) {
    %c0_i32 = arith.constant 0 : i32
    %c0_i32_0 = arith.constant 0 : i32
    %c0_i32_1 = arith.constant 0 : i32
    return %c0_i32, %c0_i32_0 : i32, i32
  }
  func.func @transform_6(%arg0: i32) -> (i32, i32) {
    %c0_i32 = arith.constant 0 : i32
    %c0_i32_0 = arith.constant 0 : i32
    %c0_i32_1 = arith.constant 0 : i32
    return %c0_i32, %c0_i32_0 : i32, i32
  }
  func.func @transform_7(%arg0: i32) -> (i32, i32) {
    %c0_i32 = arith.constant 0 : i32
    %c0_i32_0 = arith.constant 0 : i32
    return %arg0, %c0_i32 : i32, i32
  }
}

</mosaic_0001>

<bundles_post_ra>
// kernel: tpu_custom_call.1
= control target key start
LH: loop header
LB: loop body
LE: loop exit
PB: predicated region body
PF: predicated region fallthrough
CT: control target
= control target key end

     0   :  { %12 = vsyncpa [#allocation3], 0  ;;  %s902_s0 = inlined_call_operand.hbm [shape: f32[8,128], index: 0, kind: input, shape index: {}]   ;;  %s903_s1 = inlined_call_operand.hbm [shape: f32[128,128], index: 1, kind: input, shape index: {}]   ;;  %s904_s2 = inlined_call_operand.vmem [shape: f32[1,128], index: 2, kind: input, shape index: {}]   ;;  %s905_s3 = inlined_call_operand.hbm [shape: f32[128,128], index: 3, kind: input, shape index: {}]   ;;  %s906_s4 = inlined_call_operand.vmem [shape: f32[1,128], index: 4, kind: input, shape index: {}]   ;;  %s907_s5 = inlined_call_operand.hbm [shape: f32[128,128], index: 5, kind: input, shape index: {}]   ;;  %s908_s6 = inlined_call_operand.vmem [shape: f32[1,128], index: 6, kind: input, shape index: {}]   ;;  %s909_s7 = inlined_call_operand.hbm [shape: f32[8,128], index: 7, kind: output, shape index: {}]  }
   0x1   :  { %13 = vsyncpa [#allocation6], 0 }
   0x2   :  { %14 = vsyncpa [#allocation9], 0 }
   0x3   :  { %15 = vsyncpa [#allocation4], 0  ;;  %s744_s24 = smov [#allocation5]   ;;  %s626_s28 = scalar_lea.hbm %s903_s1, 2048 }
   0x4   :  { %s31_s25 = sshll.u32 %s744_s24, 4  ;;  %p627_p0 = scmp.ne.s32.totalorder %s903_s1, %s626_s28  ;;  %s32_s25 = int_to_ptr.vmem [resolvable:$true] %s31_s25 }
   0x5   :  { %p630_p1 = scmp.lt.u32.totalorder %s626_s28, %s903_s1 }
   0x7   :  { %p632_p2 = pnand %p630_p1, %p627_p0 }
   0x9   :  { %635 = shalt.err (!%p632_p2)
}
   0xa   :  { %s636_s10 = scalar_lea.vmem %s32_s25, 2048  ;;  %p641_p4 = scmp.lt.s32.totalorder %s32_s25, %s32_s25 }
   0xb   :  { %p637_p3 = scmp.ne.s32.totalorder %s32_s25, %s636_s10  ;;  %p642_p5 = scmp.lt.s32.totalorder %s636_s10, %s636_s10 }
   0xd   :  { %p643_p6 = por %p642_p5, %p641_p4 }
   0xf   :  { %p644_p7 = pnand %p643_p6, %p637_p3 }
  0x11   :  { %647 = shalt.err (!%p644_p7)
}
  0x12   :  { %s745_s11 = smov 128   ;;  %s746_s12 = smov 8  }
  0x13   :  { %37 = dma.hbm_to_vmem [thread:$0]  %s903_s1, 2048, %s32_s25, [#allocation6], %s745_s11, %s745_s11, %s746_s12  }
  0x14   :  { %s747_s15 = smov [#allocation2]   ;;  %s748_s17 = smov [#allocation7]  }
  0x15   :  { %s22_s16 = sshll.u32 %s747_s15, 4  ;;  %s45_s18 = sshll.u32 %s748_s17, 4  ;;  %s23_s16 = int_to_ptr.vmem [resolvable:$true] %s22_s16  ;;  %s46_s18 = int_to_ptr.vmem [resolvable:$true] %s45_s18 }
  0x16   :  { %s648_s21 = scalar_lea.hbm %s902_s0, 128 }
  0x17   :  { %p649_p8 = scmp.ne.s32.totalorder %s902_s0, %s648_s21  ;;  %p652_p9 = scmp.lt.u32.totalorder %s648_s21, %s902_s0 }
  0x19   :  { %p654_p10 = pnand %p652_p9, %p649_p8 }
  0x1b   :  { %657 = shalt.err (!%p654_p10)
}
  0x1c   :  { %s658_s1 = scalar_lea.vmem %s23_s16, 128  ;;  %p663_p12 = scmp.lt.s32.totalorder %s23_s16, %s23_s16 }
  0x1d   :  { %p659_p11 = scmp.ne.s32.totalorder %s23_s16, %s658_s1  ;;  %p664_p13 = scmp.lt.s32.totalorder %s658_s1, %s658_s1 }
  0x1f   :  { %p665_p0 = por %p664_p13, %p663_p12 }
  0x21   :  { %p666_p1 = pnand %p665_p0, %p659_p11 }
  0x23   :  { %669 = shalt.err (!%p666_p1)
}
  0x24   :  { %25 = dma.hbm_to_vmem [thread:$0]  %s902_s0, 128, %s23_s16, [#allocation3]  }
  0x25   :  { %s670_s30 = scalar_lea.hbm %s905_s3, 2048 }
  0x26   :  { %p671_p2 = scmp.ne.s32.totalorder %s905_s3, %s670_s30  ;;  %p674_p3 = scmp.lt.u32.totalorder %s670_s30, %s905_s3 }
  0x28   :  { %p676_p4 = pnand %p674_p3, %p671_p2 }
  0x2a   :  { %679 = shalt.err (!%p676_p4)
}
  0x2b   :  { %s680_s14 = scalar_lea.vmem %s46_s18, 2048  ;;  %p685_p6 = scmp.lt.s32.totalorder %s46_s18, %s46_s18 }
  0x2c   :  { %p681_p5 = scmp.ne.s32.totalorder %s46_s18, %s680_s14  ;;  %p686_p7 = scmp.lt.s32.totalorder %s680_s14, %s680_s14 }
  0x2e   :  { %p687_p8 = por %p686_p7, %p685_p6 }
  0x30   :  { %p688_p9 = pnand %p687_p8, %p681_p5 }
  0x32   :  { %691 = shalt.err (!%p688_p9)
}
  0x33   :  { %51 = dma.hbm_to_vmem [thread:$0]  %s905_s3, 2048, %s46_s18, [#allocation6], %s745_s11, %s745_s11, %s746_s12  }
  0x34   :  { %s749_s16 = smov [#allocation8]   ;;  %s692_s21 = scalar_lea.hbm %s907_s5, 2048 }
  0x35   :  { %s59_s17 = sshll.u32 %s749_s16, 4  ;;  %p693_p10 = scmp.ne.s32.totalorder %s907_s5, %s692_s21  ;;  %s60_s17 = int_to_ptr.vmem [resolvable:$true] %s59_s17 }
  0x36   :  { %p696_p11 = scmp.lt.u32.totalorder %s692_s21, %s907_s5 }
  0x38   :  { %p698_p12 = pnand %p696_p11, %p693_p10 }
  0x3a   :  { %701 = shalt.err (!%p698_p12)
}
  0x3b   :  { %s702_s1 = scalar_lea.vmem %s60_s17, 2048  ;;  %p707_p0 = scmp.lt.s32.totalorder %s60_s17, %s60_s17 }
  0x3c   :  { %p703_p13 = scmp.ne.s32.totalorder %s60_s17, %s702_s1  ;;  %p708_p1 = scmp.lt.s32.totalorder %s702_s1, %s702_s1 }
  0x3e   :  { %p709_p2 = por %p708_p1, %p707_p0 }
  0x40   :  { %p710_p3 = pnand %p709_p2, %p703_p13 }
  0x42   :  { %713 = shalt.err (!%p710_p3)
}
  0x43   :  { %65 = dma.hbm_to_vmem [thread:$0]  %s907_s5, 2048, %s60_s17, [#allocation9], %s745_s11, %s745_s11, %s746_s12  }
  0x44   :  { %736 = dma.done.wait [#allocation3], 128  }
  0x45   :  { %737 = vsyncadd [#allocation3], 4294967168 }
  0x46   :  { %738 = dma.done.wait [#allocation6], 4096  }
  0x47   :  { %739 = vsyncadd [#allocation6], 4294963200 }
  0x48   :  { %740 = dma.done.wait [#allocation9], 2048  }
  0x49   :  { %741 = vsyncadd [#allocation9], 4294965248  ;;  %v750_v0 = vmov 0.0|0.0   ;;  %vm751_vm0 = vmmov 0   ;;  %v752_v1 = vmov 0.0   ;;  %v81_v2 = vld [vmem:[#allocation5] sm:$0xff] }
  0x4a   :  { %540 = vmatprep.subr.bf16.mxu0 %v750_v0  ;;  %467 = vmatprep.mubr.msk.f32.mxu0 %vm751_vm0, %v752_v1  ;;  %v82_v3 = vld [vmem:[#allocation5 + $0x8] sm:$0xff]  ;;  %v83_v4 = vld [vmem:[#allocation5 + $0x10] sm:$0xff]  ;;  %v84_v6 = vld [vmem:[#allocation5 + $0x18] sm:$0xff]  ;;  %s753_s28 = smov [#allocation10]  }
  0x4b   :  { %564 = vmatprep.subr.bf16.mxu1 %v750_v0  ;;  %502 = vmatprep.mubr.msk.f32.mxu1 %vm751_vm0, %v752_v1  ;;  %v541_v5 = vpack.c.bf16 %v82_v3, %v81_v2  ;;  %v544_v7 = vpack.c.bf16 %v84_v6, %v83_v4  ;;  %v85_v8 = vld [vmem:[#allocation5 + $0x20] sm:$0xff]  ;;  %v86_v9 = vld [vmem:[#allocation5 + $0x28] sm:$0xff]  ;;  %v177_v12 = vld [vmem:[#allocation7 + $0x10] sm:$0xff]  ;;  %s370_s29 = sshll.u32 %s753_s28, 4  ;;  %s371_s29 = int_to_ptr.vmem [resolvable:$true] %s370_s29 }
  0x4c   :  { %v175_v10 = vld [vmem:[#allocation7] sm:$0xff]  ;;  %v176_v11 = vld [vmem:[#allocation7 + $0x8] sm:$0xff]  ;;  %v178_v13 = vld [vmem:[#allocation7 + $0x18] sm:$0xff]  ;;  %v547_v14 = vpack.c.bf16 %v86_v9, %v85_v8  ;;  %s714_s30 = scalar_lea.vmem %s371_s29, 128  ;;  %p719_p5 = scmp.lt.s32.totalorder %s371_s29, %s371_s29 }
  0x4d   :  { %542 = vmatpush3.bf16.msra.mxu0 %v541_v5  ;;  %v565_v15 = vpack.c.bf16 %v176_v11, %v175_v10  ;;  %v87_v16 = vld [vmem:[#allocation5 + $0x30] sm:$0xff]  ;;  %v88_v17 = vld [vmem:[#allocation5 + $0x38] sm:$0xff]  ;;  %v568_v18 = vpack.c.bf16 %v178_v13, %v177_v12  ;;  %v179_v19 = vld [vmem:[#allocation7 + $0x20] sm:$0xff]  ;;  %p715_p4 = scmp.ne.s32.totalorder %s371_s29, %s714_s30  ;;  %p720_p6 = scmp.lt.s32.totalorder %s714_s30, %s714_s30 }
  0x4e   :  { %543 = vmatprep.subr.bf16.mxu0 %v750_v0  ;;  %v180_v20 = vld [vmem:[#allocation7 + $0x28] sm:$0xff]  ;;  %v550_v21 = vpack.c.bf16 %v88_v17, %v87_v16  ;;  %v89_v22 = vld [vmem:[#allocation5 + $0x40] sm:$0xff]  ;;  %v181_v25 = vld [vmem:[#allocation7 + $0x30] sm:$0xff] }
  0x4f   :  { %566 = vmatpush3.bf16.msra.mxu1 %v565_v15  ;;  %v90_v23 = vld [vmem:[#allocation5 + $0x48] sm:$0xff]  ;;  %v571_v24 = vpack.c.bf16 %v180_v20, %v179_v19  ;;  %v182_v26 = vld [vmem:[#allocation7 + $0x38] sm:$0xff]  ;;  %v91_v28 = vld [vmem:[#allocation5 + $0x50] sm:$0xff]  ;;  %p721_p7 = por %p720_p6, %p719_p5 }
  0x50   :  { %567 = vmatprep.subr.bf16.mxu1 %v750_v0  ;;  %v553_v27 = vpack.c.bf16 %v90_v23, %v89_v22  ;;  %v92_v29 = vld [vmem:[#allocation5 + $0x58] sm:$0xff]  ;;  %v574_v30 = vpack.c.bf16 %v182_v26, %v181_v25  ;;  %v183_v31 = vld [vmem:[#allocation7 + $0x40] sm:$0xff]  ;;  %v184_v32 = vld [vmem:[#allocation7 + $0x48] sm:$0xff] }
  0x51   :  { %545 = vmatpush3.bf16.msra.mxu0 %v544_v7  ;;  %v556_v33 = vpack.c.bf16 %v92_v29, %v91_v28  ;;  %v93_v34 = vld [vmem:[#allocation5 + $0x60] sm:$0xff]  ;;  %v94_v35 = vld [vmem:[#allocation5 + $0x68] sm:$0xff]  ;;  %v577_v36 = vpack.c.bf16 %v184_v32, %v183_v31  ;;  %v185_v37 = vld [vmem:[#allocation7 + $0x50] sm:$0xff]  ;;  %p722_p8 = pnand %p721_p7, %p715_p4 }
  0x52   :  { %546 = vmatprep.subr.bf16.mxu0 %v750_v0  ;;  %v186_v38 = vld [vmem:[#allocation7 + $0x58] sm:$0xff]  ;;  %v559_v39 = vpack.c.bf16 %v94_v35, %v93_v34  ;;  %v95_v40 = vld [vmem:[#allocation5 + $0x70] sm:$0xff]  ;;  %v187_v43 = vld [vmem:[#allocation7 + $0x60] sm:$0xff] }
  0x53   :  { %569 = vmatpush3.bf16.msra.mxu1 %v568_v18  ;;  %v96_v41 = vld [vmem:[#allocation5 + $0x78] sm:$0xff]  ;;  %v580_v42 = vpack.c.bf16 %v186_v38, %v185_v37  ;;  %v188_v44 = vld [vmem:[#allocation7 + $0x68] sm:$0xff]  ;;  %v189_v48 = vld [vmem:[#allocation7 + $0x70] sm:$0xff] }
  0x54   :  { %570 = vmatprep.subr.bf16.mxu1 %v750_v0  ;;  %v562_v45 = vpack.c.bf16 %v96_v41, %v95_v40  ;;  %v583_v46 = vpack.c.bf16 %v188_v44, %v187_v43  ;;  %v80_v47 = vld [vmem:[#allocation2] sm:$0xff]  ;;  %v268_v52 = vld [vmem:[#allocation8] sm:$0xff]  ;;  %v269_v53 = vld [vmem:[#allocation8 + $0x8] sm:$0xff] }
  0x55   :  { %548 = vmatpush3.bf16.msra.mxu0 %v547_v14  ;;  %v190_v49 = vld [vmem:[#allocation7 + $0x78] sm:$0xff]  ;;  %v589_v57 = vpack.c.bf16 %v269_v53, %v268_v52  ;;  %v270_v59 = vld [vmem:[#allocation8 + $0x10] sm:$0xff]  ;;  %v272_v62 = vld [vmem:[#allocation8 + $0x20] sm:$0xff] }
  0x56   :  { %549 = vmatprep.subr.bf16.mxu0 %v750_v0  ;;  %v586_v50 = vpack.c.bf16 %v190_v49, %v189_v48  ;;  %v381_v51 = vld [vmem:[%s904_s2] ss:$0 sm:$0xff]  ;;  %v273_v63 = vld [vmem:[#allocation8 + $0x28] sm:$0xff]  ;;  %v274_v3 = vld [vmem:[#allocation8 + $0x30] sm:$0xff] }
  0x57   :  { %572 = vmatpush3.bf16.msra.mxu1 %v571_v24  ;;  %v271_v60 = vld [vmem:[#allocation8 + $0x18] sm:$0xff]  ;;  %v595_v2 = vpack.c.bf16 %v273_v63, %v272_v62  ;;  %v276_v6 = vld [vmem:[#allocation8 + $0x40] sm:$0xff]  ;;  %v277_v7 = vld [vmem:[#allocation8 + $0x48] sm:$0xff] }
  0x58   :  { %573 = vmatprep.subr.bf16.mxu1 %v750_v0  ;;  %v592_v61 = vpack.c.bf16 %v271_v60, %v270_v59  ;;  %v275_v4 = vld [vmem:[#allocation8 + $0x38] sm:$0xff]  ;;  %v601_v8 = vpack.c.bf16 %v277_v7, %v276_v6  ;;  %v280_v11 = vld [vmem:[#allocation8 + $0x60] sm:$0xff]  ;;  %v281_v12 = vld [vmem:[#allocation8 + $0x68] sm:$0xff] }
  0x59   :  { %551 = vmatpush3.bf16.msra.mxu0 %v550_v21  ;;  %v598_v5 = vpack.c.bf16 %v275_v4, %v274_v3  ;;  %v279_v9 = vld [vmem:[#allocation8 + $0x58] sm:$0xff]  ;;  %v607_v13 = vpack.c.bf16 %v281_v12, %v280_v11  ;;  %v282_v14 = vld [vmem:[#allocation8 + $0x70] sm:$0xff] }
  0x5a   :  { %552 = vmatprep.subr.bf16.mxu0 %v750_v0  ;;  %v283_v15 = vld [vmem:[#allocation8 + $0x78] sm:$0xff] }
  0x5b   :  { %575 = vmatpush3.bf16.msra.mxu1 %v574_v30  ;;  %v610_v16 = vpack.c.bf16 %v283_v15, %v282_v14  ;;  %v382_v17 = vld [vmem:[%s906_s4] ss:$0 sm:$0xff] }
  0x5c   :  { %576 = vmatprep.subr.bf16.mxu1 %v750_v0  ;;  %v383_v18 = vld [vmem:[%s908_s6] ss:$0 sm:$0xff] }
  0x5d   :  { %554 = vmatpush3.bf16.msra.mxu0 %v553_v27  ;;  %v612_v19 = vadd.f32 %v383_v18, %v382_v17 }
  0x5e   :  { %555 = vmatprep.subr.bf16.mxu0 %v750_v0 }
  0x5f   :  { %578 = vmatpush3.bf16.msra.mxu1 %v577_v36 }
  0x60   :  { %579 = vmatprep.subr.bf16.mxu1 %v750_v0 }
  0x61   :  { %557 = vmatpush3.bf16.msra.mxu0 %v556_v33 }
  0x62   :  { %558 = vmatprep.subr.bf16.mxu0 %v750_v0 }
  0x63   :  { %581 = vmatpush3.bf16.msra.mxu1 %v580_v42 }
  0x64   :  { %582 = vmatprep.subr.bf16.mxu1 %v750_v0 }
  0x65   :  { %560 = vmatpush3.bf16.msra.mxu0 %v559_v39 }
  0x66   :  { %561 = vmatprep.subr.bf16.mxu0 %v750_v0 }
  0x67   :  { %584 = vmatpush3.bf16.msra.mxu1 %v583_v46 }
  0x68   :  { %585 = vmatprep.subr.bf16.mxu1 %v750_v0 }
  0x69   :  { %563 = vmatpush3.bf16.msra.mxu0 %v562_v45 }
  0x6b   :  { %587 = vmatpush3.bf16.msra.mxu1 %v586_v50 }
  0x6c   :  { %468 = vmatmul.mubr.f32.vlgmr.msra.gmra.mrb[0].mxu0 %v80_v47  ;;  %588 = vmatprep.subr.bf16.mxu1 %v750_v0 }
 0x13f   :  { %v170_v54 = vpop.f32.mrb[0].mxu0 }
 0x140   :  { %v171_v55 = vadd.f32 %v381_v51, %v170_v54  ;;  %v469_v56 = vpop.f32.mrb[1].mxu0 }
 0x142   :  { %v174_v58 = vmax.f32 %v171_v55, 0.0 }
 0x144   :  { %503 = vmatmul.mubr.f32.vlgmr.msra.gmra.mrb[0].mxu1 %v174_v58 }
 0x145   :  { %590 = vmatpush3.bf16.msra.mxu1 %v589_v57  ;;  %537 = vmatprep.mubr.msk.f32.mxu1 %vm751_vm0, %v752_v1  ;;  %v278_v1 = vld [vmem:[#allocation8 + $0x50] sm:$0xff] }
 0x146   :  { %591 = vmatprep.subr.bf16.mxu1 %v750_v0  ;;  %v604_v10 = vpack.c.bf16 %v279_v9, %v278_v1 }
 0x149   :  { %593 = vmatpush3.bf16.msra.mxu1 %v592_v61 }
 0x14a   :  { %594 = vmatprep.subr.bf16.mxu1 %v750_v0 }
 0x14d   :  { %596 = vmatpush3.bf16.msra.mxu1 %v595_v2 }
 0x14e   :  { %597 = vmatprep.subr.bf16.mxu1 %v750_v0 }
 0x151   :  { %599 = vmatpush3.bf16.msra.mxu1 %v598_v5 }
 0x152   :  { %600 = vmatprep.subr.bf16.mxu1 %v750_v0 }
 0x155   :  { %602 = vmatpush3.bf16.msra.mxu1 %v601_v8 }
 0x156   :  { %603 = vmatprep.subr.bf16.mxu1 %v750_v0 }
 0x159   :  { %605 = vmatpush3.bf16.msra.mxu1 %v604_v10 }
 0x15a   :  { %606 = vmatprep.subr.bf16.mxu1 %v750_v0 }
 0x15d   :  { %608 = vmatpush3.bf16.msra.mxu1 %v607_v13 }
 0x15e   :  { %609 = vmatprep.subr.bf16.mxu1 %v750_v0 }
 0x161   :  { %611 = vmatpush3.bf16.msra.mxu1 %v610_v16 }
 0x164   :  { %538 = vmatmul.mubr.f32.vlgmr.msra.gmra.mrb[0].mxu1 %v80_v47 }
 0x237   :  { %v357_v20 = vpop.f32.mrb[0].mxu1 }
 0x238   :  { %v613_v21 = vadd.f32 %v612_v19, %v357_v20  ;;  %v539_v22 = vpop.f32.mrb[1].mxu1 }
 0x23a   :  { %v362_v23 = vmax.f32 %v613_v21, 0.0 }
 0x23c   :  { %363 = vst [vmem:[#allocation10] sm:$0xff] %v362_v23 }
 0x23d   :  { %725 = shalt.err (!%p722_p8)
}
 0x23e   :  { %s726_s6 = scalar_lea.hbm %s909_s7, 128 }
 0x23f   :  { %p727_p9 = scmp.ne.s32.totalorder %s909_s7, %s726_s6  ;;  %p730_p10 = scmp.lt.u32.totalorder %s726_s6, %s909_s7 }
 0x241   :  { %p732_p11 = pnand %p730_p10, %p727_p9 }
 0x243   :  { %735 = shalt.err (!%p732_p11)
}
 0x244   :  { %373 = dma.vmem_to_hbm [thread:$0]  %s371_s29, 128, %s909_s7, [#allocation4]  }
 0x245   :  { %742 = dma.done.wait [#allocation4], 128  }
 0x246   :  { %743 = vsyncadd [#allocation4], 4294967168 }
 0x247   :  { %377 = vsyncpa [#allocation3], 1 }
 0x248   :  { %378 = vsyncpa [#allocation6], 1 }
 0x249   :  { %379 = vsyncpa [#allocation9], 1 }
 0x24a   :  { %380 = vsyncpa [#allocation4], 1 }

// kernel: tpu_custom_call.1
= control target key start
LH: loop header
LB: loop body
LE: loop exit
PB: predicated region body
PF: predicated region fallthrough
CT: control target
= control target key end

     0   :  { %12 = vsyncpa [#allocation3], 0  ;;  %s902_s0 = inlined_call_operand.hbm [shape: f32[8,128], index: 0, kind: input, shape index: {}]   ;;  %s903_s1 = inlined_call_operand.hbm [shape: f32[128,128], index: 1, kind: input, shape index: {}]   ;;  %s904_s2 = inlined_call_operand.vmem [shape: f32[1,128], index: 2, kind: input, shape index: {}]   ;;  %s905_s3 = inlined_call_operand.hbm [shape: f32[128,128], index: 3, kind: input, shape index: {}]   ;;  %s906_s4 = inlined_call_operand.vmem [shape: f32[1,128], index: 4, kind: input, shape index: {}]   ;;  %s907_s5 = inlined_call_operand.hbm [shape: f32[128,128], index: 5, kind: input, shape index: {}]   ;;  %s908_s6 = inlined_call_operand.vmem [shape: f32[1,128], index: 6, kind: input, shape index: {}]   ;;  %s909_s7 = inlined_call_operand.hbm [shape: f32[8,128], index: 7, kind: output, shape index: {}]  }
   0x1   :  { %13 = vsyncpa [#allocation6], 0 }
   0x2   :  { %14 = vsyncpa [#allocation9], 0 }
   0x3   :  { %15 = vsyncpa [#allocation4], 0  ;;  %s744_s24 = smov [#allocation5]   ;;  %s626_s28 = scalar_lea.hbm %s903_s1, 2048 }
   0x4   :  { %s31_s25 = sshll.u32 %s744_s24, 4  ;;  %p627_p0 = scmp.ne.s32.totalorder %s903_s1, %s626_s28  ;;  %s32_s25 = int_to_ptr.vmem [resolvable:$true] %s31_s25 }
   0x5   :  { %p630_p1 = scmp.lt.u32.totalorder %s626_s28, %s903_s1 }
   0x7   :  { %p632_p2 = pnand %p630_p1, %p627_p0 }
   0x9   :  { %635 = shalt.err (!%p632_p2)
}
   0xa   :  { %s636_s10 = scalar_lea.vmem %s32_s25, 2048  ;;  %p641_p4 = scmp.lt.s32.totalorder %s32_s25, %s32_s25 }
   0xb   :  { %p637_p3 = scmp.ne.s32.totalorder %s32_s25, %s636_s10  ;;  %p642_p5 = scmp.lt.s32.totalorder %s636_s10, %s636_s10 }
   0xd   :  { %p643_p6 = por %p642_p5, %p641_p4 }
   0xf   :  { %p644_p7 = pnand %p643_p6, %p637_p3 }
  0x11   :  { %647 = shalt.err (!%p644_p7)
}
  0x12   :  { %s745_s11 = smov 128   ;;  %s746_s12 = smov 8  }
  0x13   :  { %37 = dma.hbm_to_vmem [thread:$0]  %s903_s1, 2048, %s32_s25, [#allocation6], %s745_s11, %s745_s11, %s746_s12  }
  0x14   :  { %s747_s15 = smov [#allocation2]   ;;  %s748_s17 = smov [#allocation7]  }
  0x15   :  { %s22_s16 = sshll.u32 %s747_s15, 4  ;;  %s45_s18 = sshll.u32 %s748_s17, 4  ;;  %s23_s16 = int_to_ptr.vmem [resolvable:$true] %s22_s16  ;;  %s46_s18 = int_to_ptr.vmem [resolvable:$true] %s45_s18 }
  0x16   :  { %s648_s21 = scalar_lea.hbm %s902_s0, 128 }
  0x17   :  { %p649_p8 = scmp.ne.s32.totalorder %s902_s0, %s648_s21  ;;  %p652_p9 = scmp.lt.u32.totalorder %s648_s21, %s902_s0 }
  0x19   :  { %p654_p10 = pnand %p652_p9, %p649_p8 }
  0x1b   :  { %657 = shalt.err (!%p654_p10)
}
  0x1c   :  { %s658_s1 = scalar_lea.vmem %s23_s16, 128  ;;  %p663_p12 = scmp.lt.s32.totalorder %s23_s16, %s23_s16 }
  0x1d   :  { %p659_p11 = scmp.ne.s32.totalorder %s23_s16, %s658_s1  ;;  %p664_p13 = scmp.lt.s32.totalorder %s658_s1, %s658_s1 }
  0x1f   :  { %p665_p0 = por %p664_p13, %p663_p12 }
  0x21   :  { %p666_p1 = pnand %p665_p0, %p659_p11 }
  0x23   :  { %669 = shalt.err (!%p666_p1)
}
  0x24   :  { %25 = dma.hbm_to_vmem [thread:$0]  %s902_s0, 128, %s23_s16, [#allocation3]  }
  0x25   :  { %s670_s30 = scalar_lea.hbm %s905_s3, 2048 }
  0x26   :  { %p671_p2 = scmp.ne.s32.totalorder %s905_s3, %s670_s30  ;;  %p674_p3 = scmp.lt.u32.totalorder %s670_s30, %s905_s3 }
  0x28   :  { %p676_p4 = pnand %p674_p3, %p671_p2 }
  0x2a   :  { %679 = shalt.err (!%p676_p4)
}
  0x2b   :  { %s680_s14 = scalar_lea.vmem %s46_s18, 2048  ;;  %p685_p6 = scmp.lt.s32.totalorder %s46_s18, %s46_s18 }
  0x2c   :  { %p681_p5 = scmp.ne.s32.totalorder %s46_s18, %s680_s14  ;;  %p686_p7 = scmp.lt.s32.totalorder %s680_s14, %s680_s14 }
  0x2e   :  { %p687_p8 = por %p686_p7, %p685_p6 }
  0x30   :  { %p688_p9 = pnand %p687_p8, %p681_p5 }
  0x32   :  { %691 = shalt.err (!%p688_p9)
}
  0x33   :  { %51 = dma.hbm_to_vmem [thread:$0]  %s905_s3, 2048, %s46_s18, [#allocation6], %s745_s11, %s745_s11, %s746_s12  }
  0x34   :  { %s749_s16 = smov [#allocation8]   ;;  %s692_s21 = scalar_lea.hbm %s907_s5, 2048 }
  0x35   :  { %s59_s17 = sshll.u32 %s749_s16, 4  ;;  %p693_p10 = scmp.ne.s32.totalorder %s907_s5, %s692_s21  ;;  %s60_s17 = int_to_ptr.vmem [resolvable:$true] %s59_s17 }
  0x36   :  { %p696_p11 = scmp.lt.u32.totalorder %s692_s21, %s907_s5 }
  0x38   :  { %p698_p12 = pnand %p696_p11, %p693_p10 }
  0x3a   :  { %701 = shalt.err (!%p698_p12)
}
  0x3b   :  { %s702_s1 = scalar_lea.vmem %s60_s17, 2048  ;;  %p707_p0 = scmp.lt.s32.totalorder %s60_s17, %s60_s17 }
  0x3c   :  { %p703_p13 = scmp.ne.s32.totalorder %s60_s17, %s702_s1  ;;  %p708_p1 = scmp.lt.s32.totalorder %s702_s1, %s702_s1 }
  0x3e   :  { %p709_p2 = por %p708_p1, %p707_p0 }
  0x40   :  { %p710_p3 = pnand %p709_p2, %p703_p13 }
  0x42   :  { %713 = shalt.err (!%p710_p3)
}
  0x43   :  { %65 = dma.hbm_to_vmem [thread:$0]  %s907_s5, 2048, %s60_s17, [#allocation9], %s745_s11, %s745_s11, %s746_s12  }
  0x44   :  { %736 = dma.done.wait [#allocation3], 128  }
  0x45   :  { %737 = vsyncadd [#allocation3], 4294967168 }
  0x46   :  { %738 = dma.done.wait [#allocation6], 4096  }
  0x47   :  { %739 = vsyncadd [#allocation6], 4294963200 }
  0x48   :  { %740 = dma.done.wait [#allocation9], 2048  }
  0x49   :  { %741 = vsyncadd [#allocation9], 4294965248  ;;  %v750_v0 = vmov 0.0|0.0   ;;  %vm751_vm0 = vmmov 0   ;;  %v752_v1 = vmov 0.0   ;;  %v81_v2 = vld [vmem:[#allocation5] sm:$0xff] }
  0x4a   :  { %540 = vmatprep.subr.bf16.mxu0 %v750_v0  ;;  %467 = vmatprep.mubr.msk.f32.mxu0 %vm751_vm0, %v752_v1  ;;  %v82_v3 = vld [vmem:[#allocation5 + $0x8] sm:$0xff]  ;;  %v83_v4 = vld [vmem:[#allocation5 + $0x10] sm:$0xff]  ;;  %v84_v6 = vld [vmem:[#allocation5 + $0x18] sm:$0xff]  ;;  %s753_s28 = smov [#allocation10]  }
  0x4b   :  { %564 = vmatprep.subr.bf16.mxu1 %v750_v0  ;;  %502 = vmatprep.mubr.msk.f32.mxu1 %vm751_vm0, %v752_v1  ;;  %v541_v5 = vpack.c.bf16 %v82_v3, %v81_v2  ;;  %v544_v7 = vpack.c.bf16 %v84_v6, %v83_v4  ;;  %v85_v8 = vld [vmem:[#allocation5 + $0x20] sm:$0xff]  ;;  %v86_v9 = vld [vmem:[#allocation5 + $0x28] sm:$0xff]  ;;  %v177_v12 = vld [vmem:[#allocation7 + $0x10] sm:$0xff]  ;;  %s370_s29 = sshll.u32 %s753_s28, 4  ;;  %s371_s29 = int_to_ptr.vmem [resolvable:$true] %s370_s29 }
  0x4c   :  { %v175_v10 = vld [vmem:[#allocation7] sm:$0xff]  ;;  %v176_v11 = vld [vmem:[#allocation7 + $0x8] sm:$0xff]  ;;  %v178_v13 = vld [vmem:[#allocation7 + $0x18] sm:$0xff]  ;;  %v547_v14 = vpack.c.bf16 %v86_v9, %v85_v8  ;;  %s714_s30 = scalar_lea.vmem %s371_s29, 128  ;;  %p719_p5 = scmp.lt.s32.totalorder %s371_s29, %s371_s29 }
  0x4d   :  { %542 = vmatpush3.bf16.msra.mxu0 %v541_v5  ;;  %v565_v15 = vpack.c.bf16 %v176_v11, %v175_v10  ;;  %v87_v16 = vld [vmem:[#allocation5 + $0x30] sm:$0xff]  ;;  %v88_v17 = vld [vmem:[#allocation5 + $0x38] sm:$0xff]  ;;  %v568_v18 = vpack.c.bf16 %v178_v13, %v177_v12  ;;  %v179_v19 = vld [vmem:[#allocation7 + $0x20] sm:$0xff]  ;;  %p715_p4 = scmp.ne.s32.totalorder %s371_s29, %s714_s30  ;;  %p720_p6 = scmp.lt.s32.totalorder %s714_s30, %s714_s30 }
  0x4e   :  { %543 = vmatprep.subr.bf16.mxu0 %v750_v0  ;;  %v180_v20 = vld [vmem:[#allocation7 + $0x28] sm:$0xff]  ;;  %v550_v21 = vpack.c.bf16 %v88_v17, %v87_v16  ;;  %v89_v22 = vld [vmem:[#allocation5 + $0x40] sm:$0xff]  ;;  %v181_v25 = vld [vmem:[#allocation7 + $0x30] sm:$0xff] }
  0x4f   :  { %566 = vmatpush3.bf16.msra.mxu1 %v565_v15  ;;  %v90_v23 = vld [vmem:[#allocation5 + $0x48] sm:$0xff]  ;;  %v571_v24 = vpack.c.bf16 %v180_v20, %v179_v19  ;;  %v182_v26 = vld [vmem:[#allocation7 + $0x38] sm:$0xff]  ;;  %v91_v28 = vld [vmem:[#allocation5 + $0x50] sm:$0xff]  ;;  %p721_p7 = por %p720_p6, %p719_p5 }
  0x50   :  { %567 = vmatprep.subr.bf16.mxu1 %v750_v0  ;;  %v553_v27 = vpack.c.bf16 %v90_v23, %v89_v22  ;;  %v92_v29 = vld [vmem:[#allocation5 + $0x58] sm:$0xff]  ;;  %v574_v30 = vpack.c.bf16 %v182_v26, %v181_v25  ;;  %v183_v31 = vld [vmem:[#allocation7 + $0x40] sm:$0xff]  ;;  %v184_v32 = vld [vmem:[#allocation7 + $0x48] sm:$0xff] }
  0x51   :  { %545 = vmatpush3.bf16.msra.mxu0 %v544_v7  ;;  %v556_v33 = vpack.c.bf16 %v92_v29, %v91_v28  ;;  %v93_v34 = vld [vmem:[#allocation5 + $0x60] sm:$0xff]  ;;  %v94_v35 = vld [vmem:[#allocation5 + $0x68] sm:$0xff]  ;;  %v577_v36 = vpack.c.bf16 %v184_v32, %v183_v31  ;;  %v185_v37 = vld [vmem:[#allocation7 + $0x50] sm:$0xff]  ;;  %p722_p8 = pnand %p721_p7, %p715_p4 }
  0x52   :  { %546 = vmatprep.subr.bf16.mxu0 %v750_v0  ;;  %v186_v38 = vld [vmem:[#allocation7 + $0x58] sm:$0xff]  ;;  %v559_v39 = vpack.c.bf16 %v94_v35, %v93_v34  ;;  %v95_v40 = vld [vmem:[#allocation5 + $0x70] sm:$0xff]  ;;  %v187_v43 = vld [vmem:[#allocation7 + $0x60] sm:$0xff] }
  0x53   :  { %569 = vmatpush3.bf16.msra.mxu1 %v568_v18  ;;  %v96_v41 = vld [vmem:[#allocation5 + $0x78] sm:$0xff]  ;;  %v580_v42 = vpack.c.bf16 %v186_v38, %v185_v37  ;;  %v188_v44 = vld [vmem:[#allocation7 + $0x68] sm:$0xff]  ;;  %v189_v48 = vld [vmem:[#allocation7 + $0x70] sm:$0xff] }
  0x54   :  { %570 = vmatprep.subr.bf16.mxu1 %v750_v0  ;;  %v562_v45 = vpack.c.bf16 %v96_v41, %v95_v40  ;;  %v583_v46 = vpack.c.bf16 %v188_v44, %v187_v43  ;;  %v80_v47 = vld [vmem:[#allocation2] sm:$0xff]  ;;  %v268_v52 = vld [vmem:[#allocation8] sm:$0xff]  ;;  %v269_v53 = vld [vmem:[#allocation8 + $0x8] sm:$0xff] }
  0x55   :  { %548 = vmatpush3.bf16.msra.mxu0 %v547_v14  ;;  %v190_v49 = vld [vmem:[#allocation7 + $0x78] sm:$0xff]  ;;  %v589_v57 = vpack.c.bf16 %v269_v53, %v268_v52  ;;  %v270_v59 = vld [vmem:[#allocation8 + $0x10] sm:$0xff]  ;;  %v272_v62 = vld [vmem:[#allocation8 + $0x20] sm:$0xff] }
  0x56   :  { %549 = vmatprep.subr.bf16.mxu0 %v750_v0  ;;  %v586_v50 = vpack.c.bf16 %v190_v49, %v189_v48  ;;  %v381_v51 = vld [vmem:[%s904_s2] ss:$0 sm:$0xff]  ;;  %v273_v63 = vld [vmem:[#allocation8 + $0x28] sm:$0xff]  ;;  %v274_v3 = vld [vmem:[#allocation8 + $0x30] sm:$0xff] }
  0x57   :  { %572 = vmatpush3.bf16.msra.mxu1 %v571_v24  ;;  %v271_v60 = vld [vmem:[#allocation8 + $0x18] sm:$0xff]  ;;  %v595_v2 = vpack.c.bf16 %v273_v63, %v272_v62  ;;  %v276_v6 = vld [vmem:[#allocation8 + $0x40] sm:$0xff]  ;;  %v277_v7 = vld [vmem:[#allocation8 + $0x48] sm:$0xff] }
  0x58   :  { %573 = vmatprep.subr.bf16.mxu1 %v750_v0  ;;  %v592_v61 = vpack.c.bf16 %v271_v60, %v270_v59  ;;  %v275_v4 = vld [vmem:[#allocation8 + $0x38] sm:$0xff]  ;;  %v601_v8 = vpack.c.bf16 %v277_v7, %v276_v6  ;;  %v280_v11 = vld [vmem:[#allocation8 + $0x60] sm:$0xff]  ;;  %v281_v12 = vld [vmem:[#allocation8 + $0x68] sm:$0xff] }
  0x59   :  { %551 = vmatpush3.bf16.msra.mxu0 %v550_v21  ;;  %v598_v5 = vpack.c.bf16 %v275_v4, %v274_v3  ;;  %v279_v9 = vld [vmem:[#allocation8 + $0x58] sm:$0xff]  ;;  %v607_v13 = vpack.c.bf16 %v281_v12, %v280_v11  ;;  %v282_v14 = vld [vmem:[#allocation8 + $0x70] sm:$0xff] }
  0x5a   :  { %552 = vmatprep.subr.bf16.mxu0 %v750_v0  ;;  %v283_v15 = vld [vmem:[#allocation8 + $0x78] sm:$0xff] }
  0x5b   :  { %575 = vmatpush3.bf16.msra.mxu1 %v574_v30  ;;  %v610_v16 = vpack.c.bf16 %v283_v15, %v282_v14  ;;  %v382_v17 = vld [vmem:[%s906_s4] ss:$0 sm:$0xff] }
  0x5c   :  { %576 = vmatprep.subr.bf16.mxu1 %v750_v0  ;;  %v383_v18 = vld [vmem:[%s908_s6] ss:$0 sm:$0xff] }
  0x5d   :  { %554 = vmatpush3.bf16.msra.mxu0 %v553_v27  ;;  %v612_v19 = vadd.f32 %v383_v18, %v382_v17 }
  0x5e   :  { %555 = vmatprep.subr.bf16.mxu0 %v750_v0 }
  0x5f   :  { %578 = vmatpush3.bf16.msra.mxu1 %v577_v36 }
  0x60   :  { %579 = vmatprep.subr.bf16.mxu1 %v750_v0 }
  0x61   :  { %557 = vmatpush3.bf16.msra.mxu0 %v556_v33 }
  0x62   :  { %558 = vmatprep.subr.bf16.mxu0 %v750_v0 }
  0x63   :  { %581 = vmatpush3.bf16.msra.mxu1 %v580_v42 }
  0x64   :  { %582 = vmatprep.subr.bf16.mxu1 %v750_v0 }
  0x65   :  { %560 = vmatpush3.bf16.msra.mxu0 %v559_v39 }
  0x66   :  { %561 = vmatprep.subr.bf16.mxu0 %v750_v0 }
  0x67   :  { %584 = vmatpush3.bf16.msra.mxu1 %v583_v46 }
  0x68   :  { %585 = vmatprep.subr.bf16.mxu1 %v750_v0 }
  0x69   :  { %563 = vmatpush3.bf16.msra.mxu0 %v562_v45 }
  0x6b   :  { %587 = vmatpush3.bf16.msra.mxu1 %v586_v50 }
  0x6c   :  { %468 = vmatmul.mubr.f32.vlgmr.msra.gmra.mrb[0].mxu0 %v80_v47  ;;  %588 = vmatprep.subr.bf16.mxu1 %v750_v0 }
 0x13f   :  { %v170_v54 = vpop.f32.mrb[0].mxu0 }
 0x140   :  { %v171_v55 = vadd.f32 %v381_v51, %v170_v54  ;;  %v469_v56 = vpop.f32.mrb[1].mxu0 }
 0x142   :  { %v174_v58 = vmax.f32 %v171_v55, 0.0 }
 0x144   :  { %503 = vmatmul.mubr.f32.vlgmr.msra.gmra.mrb[0].mxu1 %v174_v58 }
 0x145   :  { %590 = vmatpush3.bf16.msra.mxu1 %v589_v57  ;;  %537 = vmatprep.mubr.msk.f32.mxu1 %vm751_vm0, %v752_v1  ;;  %v278_v1 = vld [vmem:[#allocation8 + $0x50] sm:$0xff] }
 0x146   :  { %591 = vmatprep.subr.bf16.mxu1 %v750_v0  ;;  %v604_v10 = vpack.c.bf16 %v279_v9, %v278_v1 }
 0x149   :  { %593 = vmatpush3.bf16.msra.mxu1 %v592_v61 }
 0x14a   :  { %594 = vmatprep.subr.bf16.mxu1 %v750_v0 }
 0x14d   :  { %596 = vmatpush3.bf16.msra.mxu1 %v595_v2 }
 0x14e   :  { %597 = vmatprep.subr.bf16.mxu1 %v750_v0 }
 0x151   :  { %599 = vmatpush3.bf16.msra.mxu1 %v598_v5 }
 0x152   :  { %600 = vmatprep.subr.bf16.mxu1 %v750_v0 }
 0x155   :  { %602 = vmatpush3.bf16.msra.mxu1 %v601_v8 }
 0x156   :  { %603 = vmatprep.subr.bf16.mxu1 %v750_v0 }
 0x159   :  { %605 = vmatpush3.bf16.msra.mxu1 %v604_v10 }
 0x15a   :  { %606 = vmatprep.subr.bf16.mxu1 %v750_v0 }
 0x15d   :  { %608 = vmatpush3.bf16.msra.mxu1 %v607_v13 }
 0x15e   :  { %609 = vmatprep.subr.bf16.mxu1 %v750_v0 }
 0x161   :  { %611 = vmatpush3.bf16.msra.mxu1 %v610_v16 }
 0x164   :  { %538 = vmatmul.mubr.f32.vlgmr.msra.gmra.mrb[0].mxu1 %v80_v47 }
 0x237   :  { %v357_v20 = vpop.f32.mrb[0].mxu1 }
 0x238   :  { %v613_v21 = vadd.f32 %v612_v19, %v357_v20  ;;  %v539_v22 = vpop.f32.mrb[1].mxu1 }
 0x23a   :  { %v362_v23 = vmax.f32 %v613_v21, 0.0 }
 0x23c   :  { %363 = vst [vmem:[#allocation10] sm:$0xff] %v362_v23 }
 0x23d   :  { %725 = shalt.err (!%p722_p8)
}
 0x23e   :  { %s726_s6 = scalar_lea.hbm %s909_s7, 128 }
 0x23f   :  { %p727_p9 = scmp.ne.s32.totalorder %s909_s7, %s726_s6  ;;  %p730_p10 = scmp.lt.u32.totalorder %s726_s6, %s909_s7 }
 0x241   :  { %p732_p11 = pnand %p730_p10, %p727_p9 }
 0x243   :  { %735 = shalt.err (!%p732_p11)
}
 0x244   :  { %373 = dma.vmem_to_hbm [thread:$0]  %s371_s29, 128, %s909_s7, [#allocation4]  }
 0x245   :  { %742 = dma.done.wait [#allocation4], 128  }
 0x246   :  { %743 = vsyncadd [#allocation4], 4294967168 }
 0x247   :  { %377 = vsyncpa [#allocation3], 1 }
 0x248   :  { %378 = vsyncpa [#allocation6], 1 }
 0x249   :  { %379 = vsyncpa [#allocation9], 1 }
 0x24a   :  { %380 = vsyncpa [#allocation4], 1 }

</bundles_post_ra>
